<compile_context>
chip_gen: v6e
topology: v6e:2x2x1
jax: 0.10.0
libtpu: 0.0.40
codegen_flags: <defaults>
</compile_context>

<pallas_src>
import jax
import jax.numpy as jnp
from jax.experimental import pallas as pl
from jax.experimental.pallas import tpu as pltpu

NIN, NH0, NH1, NOUT = 2, 12, 10, 1
TB = 512  # batch-tile width (lanes); multiple of 128, tiny VMEM footprint


def mlp_kernel(x_ref, w1_ref, b1_ref, w2_ref, b2_ref, w3_ref, b3_ref, o_ref):
    # x_ref: (NIN, TB)   activations, batch on lanes
    # wN_ref: (out, in)  PyTorch nn.Linear weight layout
    # bN_ref: (out, 1)
    # o_ref: (NOUT, TB)
    tb = x_ref.shape[1]
    x = x_ref[...]          # (NIN, TB)
    w1 = w1_ref[...]        # (NH0, NIN)
    w2 = w2_ref[...]        # (NH1, NH0)
    w3 = w3_ref[...]        # (NOUT, NH1)

    # Layer 1: h1 = relu(W1 @ x + b1)  -- unrolled over NIN (=2) on the VPU.
    h1 = jnp.broadcast_to(b1_ref[...], (NH0, tb))
    for k in range(NIN):
        h1 = h1 + w1[:, k:k + 1] * x[k:k + 1, :]
    h1 = jnp.maximum(h1, 0.0)

    # Layer 2: h2 = relu(W2 @ h1 + b2)  -- unrolled over NH0 (=12).
    h2 = jnp.broadcast_to(b2_ref[...], (NH1, tb))
    for k in range(NH0):
        h2 = h2 + w2[:, k:k + 1] * h1[k:k + 1, :]
    h2 = jnp.maximum(h2, 0.0)

    # Layer 3: out = W3 @ h2 + b3  -- unrolled over NH1 (=10).
    out = jnp.broadcast_to(b3_ref[...], (NOUT, tb))
    for k in range(NH1):
        out = out + w3[:, k:k + 1] * h2[k:k + 1, :]

    o_ref[...] = out.astype(o_ref.dtype)


def net_forward(x, params):
    """x: (B, NIN) float32. params: PyTorch-layout weights (out,in) and biases (out,)."""
    B = x.shape[0]
    b_pad = ((B + TB - 1) // TB) * TB
    n_tiles = b_pad // TB

    # Feature-major transpose + zero-pad the batch to a multiple of TB.
    # Padded lanes compute garbage that is sliced off below.
    x_t = jnp.pad(x.astype(jnp.float32).T, ((0, 0), (0, b_pad - B)))

    w1, w2, w3 = params["w1"], params["w2"], params["w3"]
    b1 = params["b1"].reshape(NH0, 1)
    b2 = params["b2"].reshape(NH1, 1)
    b3 = params["b3"].reshape(NOUT, 1)

    def full_spec(shape):
        # Tiny weight/bias arrays: full-array block, constant index -> VMEM-resident.
        return pl.BlockSpec(shape, lambda i: tuple(0 for _ in shape))

    out_t = pl.pallas_call(
        mlp_kernel,
        out_shape=jax.ShapeDtypeStruct((NOUT, b_pad), jnp.float32),
        grid=(n_tiles,),
        in_specs=[
            pl.BlockSpec((NIN, TB), lambda i: (0, i)),   # batch-tiled input
            full_spec(w1.shape), full_spec(b1.shape),
            full_spec(w2.shape), full_spec(b2.shape),
            full_spec(w3.shape), full_spec(b3.shape),
        ],
        out_specs=pl.BlockSpec((NOUT, TB), lambda i: (0, i)),  # lane-dense output
        compiler_params=pltpu.CompilerParams(
            dimension_semantics=("parallel",),  # v7x: shard batch tiles across 2 TCs
        ),
    )(x_t, w1, b1, w2, b2, w3, b3)

    # Back to PyTorch layout (B, NOUT), dropping the padded lanes.
    return out_t[:, :B].T


def init_params(key):
    """Deterministic PyTorch nn.Linear-style init: U(-1/sqrt(fan_in), 1/sqrt(fan_in)).
    Weights stored PyTorch-style as (out_features, in_features)."""
    ks = jax.random.split(key, 6)

    def linear(kw, kb, fan_in, fan_out):
        bound = 1.0 / jnp.sqrt(float(fan_in))
        w = jax.random.uniform(kw, (fan_out, fan_in), jnp.float32, -bound, bound)
        b = jax.random.uniform(kb, (fan_out,), jnp.float32, -bound, bound)
        return w, b

    w1, b1 = linear(ks[0], ks[1], NIN, NH0)
    w2, b2 = linear(ks[2], ks[3], NH0, NH1)
    w3, b3 = linear(ks[4], ks[5], NH1, NOUT)
    return {"w1": w1, "b1": b1, "w2": w2, "b2": b2, "w3": w3, "b3": b3}


if __name__ == "__main__":
    key = jax.random.PRNGKey(0)
    pkey, xkey = jax.random.split(key)
    params = init_params(pkey)

    # Note: at tiny B this op is pure launch/DMA overhead; the kernel pays off
    # once B is in the thousands (batch tiles pipelined across the grid).
    for B in (8, 600):  # 600 exercises multi-tile grid + padded tail correctness
        x = jax.random.normal(jax.random.fold_in(xkey, B), (B, NIN), jnp.float32)
        out = jax.block_until_ready(net_forward(x, params))

        # Pure-JAX reference with PyTorch Linear semantics: y = x @ W.T + b.
        h1 = jnp.maximum(x @ params["w1"].T + params["b1"], 0.0)
        h2 = jnp.maximum(h1 @ params["w2"].T + params["b2"], 0.0)
        ref = h2 @ params["w3"].T + params["b3"]

        assert out.shape == (B, NOUT)
        assert jnp.allclose(out, ref, atol=1e-5, rtol=1e-5)

    print("KERNEL_OK")
</pallas_src>

<mosaic_0001>
module attributes {stable_mosaic.version = 11 : i64} {
  func.func @mlp_kernel(%arg0: i32, %arg1: memref<2x512xf32, #tpu.memory_space<vmem>>, %arg2: memref<12x2xf32, #tpu.memory_space<vmem>>, %arg3: memref<12x1xf32, #tpu.memory_space<vmem>>, %arg4: memref<10x12xf32, #tpu.memory_space<vmem>>, %arg5: memref<10x1xf32, #tpu.memory_space<vmem>>, %arg6: memref<1x10xf32, #tpu.memory_space<vmem>>, %arg7: memref<1x1xf32, #tpu.memory_space<vmem>>, %arg8: memref<1x512xf32, #tpu.memory_space<vmem>>) attributes {dimension_semantics = [#tpu.dimension_semantics<parallel>], iteration_bounds = array<i64: 1>, scalar_prefetch = 0 : i64, scratch_operands = 0 : i64, tpu.core_type = #tpu.core_type<tc>, window_params = [{transform_indices = @transform_0, window_bounds = array<i64: 2, 512>}, {pipeline_mode = #tpu.pipeline_mode<synchronous>, transform_indices = @transform_1, window_bounds = array<i64: 12, 2>}, {pipeline_mode = #tpu.pipeline_mode<synchronous>, transform_indices = @transform_2, window_bounds = array<i64: 12, 1>}, {pipeline_mode = #tpu.pipeline_mode<synchronous>, transform_indices = @transform_3, window_bounds = array<i64: 10, 12>}, {pipeline_mode = #tpu.pipeline_mode<synchronous>, transform_indices = @transform_4, window_bounds = array<i64: 10, 1>}, {pipeline_mode = #tpu.pipeline_mode<synchronous>, transform_indices = @transform_5, window_bounds = array<i64: 1, 10>}, {pipeline_mode = #tpu.pipeline_mode<synchronous>, transform_indices = @transform_6, window_bounds = array<i64: 1, 1>}, {transform_indices = @transform_7, window_bounds = array<i64: 1, 512>}]} {
    %c0 = arith.constant 0 : index
    %c0_0 = arith.constant 0 : index
    %0 = vector.load %arg1[%c0, %c0_0] : memref<2x512xf32, #tpu.memory_space<vmem>>, vector<2x512xf32>
    %c0_1 = arith.constant 0 : index
    %c0_2 = arith.constant 0 : index
    %1 = vector.load %arg2[%c0_1, %c0_2] : memref<12x2xf32, #tpu.memory_space<vmem>>, vector<12x2xf32>
    %c0_3 = arith.constant 0 : index
    %c0_4 = arith.constant 0 : index
    %2 = vector.load %arg4[%c0_3, %c0_4] : memref<10x12xf32, #tpu.memory_space<vmem>>, vector<10x12xf32>
    %c0_5 = arith.constant 0 : index
    %c0_6 = arith.constant 0 : index
    %3 = vector.load %arg6[%c0_5, %c0_6] : memref<1x10xf32, #tpu.memory_space<vmem>>, vector<1x10xf32>
    %c0_7 = arith.constant 0 : index
    %c0_8 = arith.constant 0 : index
    %4 = vector.load %arg3[%c0_7, %c0_8] : memref<12x1xf32, #tpu.memory_space<vmem>>, vector<12x1xf32>
    %5 = vector.shape_cast %4 : vector<12x1xf32> to vector<12x1xf32>
    %6 = vector.broadcast %5 : vector<12x1xf32> to vector<12x512xf32>
    %7 = vector.extract_strided_slice %1 {offsets = [0, 0], sizes = [12, 1], strides = [1, 1]} : vector<12x2xf32> to vector<12x1xf32>
    %8 = vector.extract_strided_slice %0 {offsets = [0, 0], sizes = [1, 512], strides = [1, 1]} : vector<2x512xf32> to vector<1x512xf32>
    %9 = vector.broadcast %7 : vector<12x1xf32> to vector<12x512xf32>
    %10 = vector.broadcast %8 : vector<1x512xf32> to vector<12x512xf32>
    %11 = arith.mulf %9, %10 : vector<12x512xf32>
    %12 = arith.addf %6, %11 : vector<12x512xf32>
    %13 = vector.extract_strided_slice %1 {offsets = [0, 1], sizes = [12, 1], strides = [1, 1]} : vector<12x2xf32> to vector<12x1xf32>
    %14 = vector.extract_strided_slice %0 {offsets = [1, 0], sizes = [1, 512], strides = [1, 1]} : vector<2x512xf32> to vector<1x512xf32>
    %15 = vector.broadcast %13 : vector<12x1xf32> to vector<12x512xf32>
    %16 = vector.broadcast %14 : vector<1x512xf32> to vector<12x512xf32>
    %17 = arith.mulf %15, %16 : vector<12x512xf32>
    %18 = arith.addf %12, %17 : vector<12x512xf32>
    %cst = arith.constant 0.000000e+00 : f32
    %19 = vector.broadcast %cst : f32 to vector<12x512xf32>
    %20 = arith.maximumf %18, %19 : vector<12x512xf32>
    %c0_9 = arith.constant 0 : index
    %c0_10 = arith.constant 0 : index
    %21 = vector.load %arg5[%c0_9, %c0_10] : memref<10x1xf32, #tpu.memory_space<vmem>>, vector<10x1xf32>
    %22 = vector.shape_cast %21 : vector<10x1xf32> to vector<10x1xf32>
    %23 = vector.broadcast %22 : vector<10x1xf32> to vector<10x512xf32>
    %24 = vector.extract_strided_slice %2 {offsets = [0, 0], sizes = [10, 1], strides = [1, 1]} : vector<10x12xf32> to vector<10x1xf32>
    %25 = vector.extract_strided_slice %20 {offsets = [0, 0], sizes = [1, 512], strides = [1, 1]} : vector<12x512xf32> to vector<1x512xf32>
    %26 = vector.broadcast %24 : vector<10x1xf32> to vector<10x512xf32>
    %27 = vector.broadcast %25 : vector<1x512xf32> to vector<10x512xf32>
    %28 = arith.mulf %26, %27 : vector<10x512xf32>
    %29 = arith.addf %23, %28 : vector<10x512xf32>
    %30 = vector.extract_strided_slice %2 {offsets = [0, 1], sizes = [10, 1], strides = [1, 1]} : vector<10x12xf32> to vector<10x1xf32>
    %31 = vector.extract_strided_slice %20 {offsets = [1, 0], sizes = [1, 512], strides = [1, 1]} : vector<12x512xf32> to vector<1x512xf32>
    %32 = vector.broadcast %30 : vector<10x1xf32> to vector<10x512xf32>
    %33 = vector.broadcast %31 : vector<1x512xf32> to vector<10x512xf32>
    %34 = arith.mulf %32, %33 : vector<10x512xf32>
    %35 = arith.addf %29, %34 : vector<10x512xf32>
    %36 = vector.extract_strided_slice %2 {offsets = [0, 2], sizes = [10, 1], strides = [1, 1]} : vector<10x12xf32> to vector<10x1xf32>
    %37 = vector.extract_strided_slice %20 {offsets = [2, 0], sizes = [1, 512], strides = [1, 1]} : vector<12x512xf32> to vector<1x512xf32>
    %38 = vector.broadcast %36 : vector<10x1xf32> to vector<10x512xf32>
    %39 = vector.broadcast %37 : vector<1x512xf32> to vector<10x512xf32>
    %40 = arith.mulf %38, %39 : vector<10x512xf32>
    %41 = arith.addf %35, %40 : vector<10x512xf32>
    %42 = vector.extract_strided_slice %2 {offsets = [0, 3], sizes = [10, 1], strides = [1, 1]} : vector<10x12xf32> to vector<10x1xf32>
    %43 = vector.extract_strided_slice %20 {offsets = [3, 0], sizes = [1, 512], strides = [1, 1]} : vector<12x512xf32> to vector<1x512xf32>
    %44 = vector.broadcast %42 : vector<10x1xf32> to vector<10x512xf32>
    %45 = vector.broadcast %43 : vector<1x512xf32> to vector<10x512xf32>
    %46 = arith.mulf %44, %45 : vector<10x512xf32>
    %47 = arith.addf %41, %46 : vector<10x512xf32>
    %48 = vector.extract_strided_slice %2 {offsets = [0, 4], sizes = [10, 1], strides = [1, 1]} : vector<10x12xf32> to vector<10x1xf32>
    %49 = vector.extract_strided_slice %20 {offsets = [4, 0], sizes = [1, 512], strides = [1, 1]} : vector<12x512xf32> to vector<1x512xf32>
    %50 = vector.broadcast %48 : vector<10x1xf32> to vector<10x512xf32>
    %51 = vector.broadcast %49 : vector<1x512xf32> to vector<10x512xf32>
    %52 = arith.mulf %50, %51 : vector<10x512xf32>
    %53 = arith.addf %47, %52 : vector<10x512xf32>
    %54 = vector.extract_strided_slice %2 {offsets = [0, 5], sizes = [10, 1], strides = [1, 1]} : vector<10x12xf32> to vector<10x1xf32>
    %55 = vector.extract_strided_slice %20 {offsets = [5, 0], sizes = [1, 512], strides = [1, 1]} : vector<12x512xf32> to vector<1x512xf32>
    %56 = vector.broadcast %54 : vector<10x1xf32> to vector<10x512xf32>
    %57 = vector.broadcast %55 : vector<1x512xf32> to vector<10x512xf32>
    %58 = arith.mulf %56, %57 : vector<10x512xf32>
    %59 = arith.addf %53, %58 : vector<10x512xf32>
    %60 = vector.extract_strided_slice %2 {offsets = [0, 6], sizes = [10, 1], strides = [1, 1]} : vector<10x12xf32> to vector<10x1xf32>
    %61 = vector.extract_strided_slice %20 {offsets = [6, 0], sizes = [1, 512], strides = [1, 1]} : vector<12x512xf32> to vector<1x512xf32>
    %62 = vector.broadcast %60 : vector<10x1xf32> to vector<10x512xf32>
    %63 = vector.broadcast %61 : vector<1x512xf32> to vector<10x512xf32>
    %64 = arith.mulf %62, %63 : vector<10x512xf32>
    %65 = arith.addf %59, %64 : vector<10x512xf32>
    %66 = vector.extract_strided_slice %2 {offsets = [0, 7], sizes = [10, 1], strides = [1, 1]} : vector<10x12xf32> to vector<10x1xf32>
    %67 = vector.extract_strided_slice %20 {offsets = [7, 0], sizes = [1, 512], strides = [1, 1]} : vector<12x512xf32> to vector<1x512xf32>
    %68 = vector.broadcast %66 : vector<10x1xf32> to vector<10x512xf32>
    %69 = vector.broadcast %67 : vector<1x512xf32> to vector<10x512xf32>
    %70 = arith.mulf %68, %69 : vector<10x512xf32>
    %71 = arith.addf %65, %70 : vector<10x512xf32>
    %72 = vector.extract_strided_slice %2 {offsets = [0, 8], sizes = [10, 1], strides = [1, 1]} : vector<10x12xf32> to vector<10x1xf32>
    %73 = vector.extract_strided_slice %20 {offsets = [8, 0], sizes = [1, 512], strides = [1, 1]} : vector<12x512xf32> to vector<1x512xf32>
    %74 = vector.broadcast %72 : vector<10x1xf32> to vector<10x512xf32>
    %75 = vector.broadcast %73 : vector<1x512xf32> to vector<10x512xf32>
    %76 = arith.mulf %74, %75 : vector<10x512xf32>
    %77 = arith.addf %71, %76 : vector<10x512xf32>
    %78 = vector.extract_strided_slice %2 {offsets = [0, 9], sizes = [10, 1], strides = [1, 1]} : vector<10x12xf32> to vector<10x1xf32>
    %79 = vector.extract_strided_slice %20 {offsets = [9, 0], sizes = [1, 512], strides = [1, 1]} : vector<12x512xf32> to vector<1x512xf32>
    %80 = vector.broadcast %78 : vector<10x1xf32> to vector<10x512xf32>
    %81 = vector.broadcast %79 : vector<1x512xf32> to vector<10x512xf32>
    %82 = arith.mulf %80, %81 : vector<10x512xf32>
    %83 = arith.addf %77, %82 : vector<10x512xf32>
    %84 = vector.extract_strided_slice %2 {offsets = [0, 10], sizes = [10, 1], strides = [1, 1]} : vector<10x12xf32> to vector<10x1xf32>
    %85 = vector.extract_strided_slice %20 {offsets = [10, 0], sizes = [1, 512], strides = [1, 1]} : vector<12x512xf32> to vector<1x512xf32>
    %86 = vector.broadcast %84 : vector<10x1xf32> to vector<10x512xf32>
    %87 = vector.broadcast %85 : vector<1x512xf32> to vector<10x512xf32>
    %88 = arith.mulf %86, %87 : vector<10x512xf32>
    %89 = arith.addf %83, %88 : vector<10x512xf32>
    %90 = vector.extract_strided_slice %2 {offsets = [0, 11], sizes = [10, 1], strides = [1, 1]} : vector<10x12xf32> to vector<10x1xf32>
    %91 = vector.extract_strided_slice %20 {offsets = [11, 0], sizes = [1, 512], strides = [1, 1]} : vector<12x512xf32> to vector<1x512xf32>
    %92 = vector.broadcast %90 : vector<10x1xf32> to vector<10x512xf32>
    %93 = vector.broadcast %91 : vector<1x512xf32> to vector<10x512xf32>
    %94 = arith.mulf %92, %93 : vector<10x512xf32>
    %95 = arith.addf %89, %94 : vector<10x512xf32>
    %cst_11 = arith.constant 0.000000e+00 : f32
    %96 = vector.broadcast %cst_11 : f32 to vector<10x512xf32>
    %97 = arith.maximumf %95, %96 : vector<10x512xf32>
    %c0_12 = arith.constant 0 : index
    %c0_13 = arith.constant 0 : index
    %98 = vector.load %arg7[%c0_12, %c0_13] : memref<1x1xf32, #tpu.memory_space<vmem>>, vector<1x1xf32>
    %99 = vector.shape_cast %98 : vector<1x1xf32> to vector<1x1xf32>
    %100 = vector.broadcast %99 : vector<1x1xf32> to vector<1x512xf32>
    %101 = vector.extract_strided_slice %3 {offsets = [0, 0], sizes = [1, 1], strides = [1, 1]} : vector<1x10xf32> to vector<1x1xf32>
    %102 = vector.extract_strided_slice %97 {offsets = [0, 0], sizes = [1, 512], strides = [1, 1]} : vector<10x512xf32> to vector<1x512xf32>
    %103 = vector.broadcast %101 : vector<1x1xf32> to vector<1x512xf32>
    %104 = arith.mulf %103, %102 : vector<1x512xf32>
    %105 = arith.addf %100, %104 : vector<1x512xf32>
    %106 = vector.extract_strided_slice %3 {offsets = [0, 1], sizes = [1, 1], strides = [1, 1]} : vector<1x10xf32> to vector<1x1xf32>
    %107 = vector.extract_strided_slice %97 {offsets = [1, 0], sizes = [1, 512], strides = [1, 1]} : vector<10x512xf32> to vector<1x512xf32>
    %108 = vector.broadcast %106 : vector<1x1xf32> to vector<1x512xf32>
    %109 = arith.mulf %108, %107 : vector<1x512xf32>
    %110 = arith.addf %105, %109 : vector<1x512xf32>
    %111 = vector.extract_strided_slice %3 {offsets = [0, 2], sizes = [1, 1], strides = [1, 1]} : vector<1x10xf32> to vector<1x1xf32>
    %112 = vector.extract_strided_slice %97 {offsets = [2, 0], sizes = [1, 512], strides = [1, 1]} : vector<10x512xf32> to vector<1x512xf32>
    %113 = vector.broadcast %111 : vector<1x1xf32> to vector<1x512xf32>
    %114 = arith.mulf %113, %112 : vector<1x512xf32>
    %115 = arith.addf %110, %114 : vector<1x512xf32>
    %116 = vector.extract_strided_slice %3 {offsets = [0, 3], sizes = [1, 1], strides = [1, 1]} : vector<1x10xf32> to vector<1x1xf32>
    %117 = vector.extract_strided_slice %97 {offsets = [3, 0], sizes = [1, 512], strides = [1, 1]} : vector<10x512xf32> to vector<1x512xf32>
    %118 = vector.broadcast %116 : vector<1x1xf32> to vector<1x512xf32>
    %119 = arith.mulf %118, %117 : vector<1x512xf32>
    %120 = arith.addf %115, %119 : vector<1x512xf32>
    %121 = vector.extract_strided_slice %3 {offsets = [0, 4], sizes = [1, 1], strides = [1, 1]} : vector<1x10xf32> to vector<1x1xf32>
    %122 = vector.extract_strided_slice %97 {offsets = [4, 0], sizes = [1, 512], strides = [1, 1]} : vector<10x512xf32> to vector<1x512xf32>
    %123 = vector.broadcast %121 : vector<1x1xf32> to vector<1x512xf32>
    %124 = arith.mulf %123, %122 : vector<1x512xf32>
    %125 = arith.addf %120, %124 : vector<1x512xf32>
    %126 = vector.extract_strided_slice %3 {offsets = [0, 5], sizes = [1, 1], strides = [1, 1]} : vector<1x10xf32> to vector<1x1xf32>
    %127 = vector.extract_strided_slice %97 {offsets = [5, 0], sizes = [1, 512], strides = [1, 1]} : vector<10x512xf32> to vector<1x512xf32>
    %128 = vector.broadcast %126 : vector<1x1xf32> to vector<1x512xf32>
    %129 = arith.mulf %128, %127 : vector<1x512xf32>
    %130 = arith.addf %125, %129 : vector<1x512xf32>
    %131 = vector.extract_strided_slice %3 {offsets = [0, 6], sizes = [1, 1], strides = [1, 1]} : vector<1x10xf32> to vector<1x1xf32>
    %132 = vector.extract_strided_slice %97 {offsets = [6, 0], sizes = [1, 512], strides = [1, 1]} : vector<10x512xf32> to vector<1x512xf32>
    %133 = vector.broadcast %131 : vector<1x1xf32> to vector<1x512xf32>
    %134 = arith.mulf %133, %132 : vector<1x512xf32>
    %135 = arith.addf %130, %134 : vector<1x512xf32>
    %136 = vector.extract_strided_slice %3 {offsets = [0, 7], sizes = [1, 1], strides = [1, 1]} : vector<1x10xf32> to vector<1x1xf32>
    %137 = vector.extract_strided_slice %97 {offsets = [7, 0], sizes = [1, 512], strides = [1, 1]} : vector<10x512xf32> to vector<1x512xf32>
    %138 = vector.broadcast %136 : vector<1x1xf32> to vector<1x512xf32>
    %139 = arith.mulf %138, %137 : vector<1x512xf32>
    %140 = arith.addf %135, %139 : vector<1x512xf32>
    %141 = vector.extract_strided_slice %3 {offsets = [0, 8], sizes = [1, 1], strides = [1, 1]} : vector<1x10xf32> to vector<1x1xf32>
    %142 = vector.extract_strided_slice %97 {offsets = [8, 0], sizes = [1, 512], strides = [1, 1]} : vector<10x512xf32> to vector<1x512xf32>
    %143 = vector.broadcast %141 : vector<1x1xf32> to vector<1x512xf32>
    %144 = arith.mulf %143, %142 : vector<1x512xf32>
    %145 = arith.addf %140, %144 : vector<1x512xf32>
    %146 = vector.extract_strided_slice %3 {offsets = [0, 9], sizes = [1, 1], strides = [1, 1]} : vector<1x10xf32> to vector<1x1xf32>
    %147 = vector.extract_strided_slice %97 {offsets = [9, 0], sizes = [1, 512], strides = [1, 1]} : vector<10x512xf32> to vector<1x512xf32>
    %148 = vector.broadcast %146 : vector<1x1xf32> to vector<1x512xf32>
    %149 = arith.mulf %148, %147 : vector<1x512xf32>
    %150 = arith.addf %145, %149 : vector<1x512xf32>
    %c0_14 = arith.constant 0 : index
    %c0_15 = arith.constant 0 : index
    %151 = vector.load %arg8[%c0_14, %c0_15] : memref<1x512xf32, #tpu.memory_space<vmem>>, vector<1x512xf32>
    tpu.vector_store %arg8[%c0_14, %c0_15], %150 {strides = array<i32>} : memref<1x512xf32, #tpu.memory_space<vmem>>, vector<1x512xf32>,
    return
  }
  func.func @transform_0(%arg0: i32) -> (i32, i32) {
    %c0_i32 = arith.constant 0 : i32
    %c0_i32_0 = arith.constant 0 : i32
    return %c0_i32, %arg0 : i32, i32
  }
  func.func @transform_1(%arg0: i32) -> (i32, i32) {
    %c0_i32 = arith.constant 0 : i32
    %c0_i32_0 = arith.constant 0 : i32
    %c0_i32_1 = arith.constant 0 : i32
    return %c0_i32, %c0_i32_0 : i32, i32
  }
  func.func @transform_2(%arg0: i32) -> (i32, i32) {
    %c0_i32 = arith.constant 0 : i32
    %c0_i32_0 = arith.constant 0 : i32
    %c0_i32_1 = arith.constant 0 : i32
    return %c0_i32, %c0_i32_0 : i32, i32
  }
  func.func @transform_3(%arg0: i32) -> (i32, i32) {
    %c0_i32 = arith.constant 0 : i32
    %c0_i32_0 = arith.constant 0 : i32
    %c0_i32_1 = arith.constant 0 : i32
    return %c0_i32, %c0_i32_0 : i32, i32
  }
  func.func @transform_4(%arg0: i32) -> (i32, i32) {
    %c0_i32 = arith.constant 0 : i32
    %c0_i32_0 = arith.constant 0 : i32
    %c0_i32_1 = arith.constant 0 : i32
    return %c0_i32, %c0_i32_0 : i32, i32
  }
  func.func @transform_5(%arg0: i32) -> (i32, i32) {
    %c0_i32 = arith.constant 0 : i32
    %c0_i32_0 = arith.constant 0 : i32
    %c0_i32_1 = arith.constant 0 : i32
    return %c0_i32, %c0_i32_0 : i32, i32
  }
  func.func @transform_6(%arg0: i32) -> (i32, i32) {
    %c0_i32 = arith.constant 0 : i32
    %c0_i32_0 = arith.constant 0 : i32
    %c0_i32_1 = arith.constant 0 : i32
    return %c0_i32, %c0_i32_0 : i32, i32
  }
  func.func @transform_7(%arg0: i32) -> (i32, i32) {
    %c0_i32 = arith.constant 0 : i32
    %c0_i32_0 = arith.constant 0 : i32
    return %c0_i32, %arg0 : i32, i32
  }
}

</mosaic_0001>

<bundles_post_ra>
// kernel: tpu_custom_call.1
= control target key start
LH: loop header
LB: loop body
LE: loop exit
PB: predicated region body
PF: predicated region fallthrough
CT: control target
= control target key end

     0   :  { %s1755_s0 = inlined_call_operand.vmem [shape: f32[2,512], index: 0, kind: input, shape index: {}]   ;;  %s1756_s1 = inlined_call_operand.vmem [shape: f32[12,2], index: 1, kind: input, shape index: {}]   ;;  %s1757_s2 = inlined_call_operand.vmem [shape: f32[12,1], index: 2, kind: input, shape index: {}]   ;;  %s1758_s3 = inlined_call_operand.vmem [shape: f32[10,12], index: 3, kind: input, shape index: {}]   ;;  %s1759_s4 = inlined_call_operand.vmem [shape: f32[10,1], index: 4, kind: input, shape index: {}]   ;;  %s1760_s5 = inlined_call_operand.vmem [shape: f32[1,10], index: 5, kind: input, shape index: {}]   ;;  %s1761_s6 = inlined_call_operand.<no memory space> [shape: f32[1,1], index: 6, kind: input, shape index: {}]   ;;  %s1762_s7 = inlined_call_operand.hbm [shape: f32[1,512], index: 7, kind: output, shape index: {}]  }
   0x1   :  { %v12_v0 = vstv %s1761_s6 }
   0x2   :  { %13 = vst [vmem:[#allocation2] sm:$0x1] %v12_v0 }
   0x3   :  { %v35_v1 = vld [vmem:[%s1757_s2] sm:$0xff]  ;;  %v1068_v3 = vmov 0   ;;  %v36_v4 = vld [vmem:[%s1757_s2 + $0x8] sm:$0xf] }
   0x4   :  { %v30_v2 = vld [vmem:[%s1756_s1] sm:$0xff]  ;;  %1010 = vset.pattern.permute.xlu1 %v1068_v3  ;;  %1009 = vset.pattern.permute.xlu0 %v1068_v3  ;;  %v31_v5 = vld [vmem:[%s1756_s1 + $0x8] sm:$0xf] }
   0x5   :  { %39 = vperm.xlu0 %1009, %v35_v1   ;;  %49 = vperm.xlu1 %1010, %v30_v2  }
   0x6   :  { %14 = vsyncpa [#allocation4], 0  ;;  %v179_v6 = vld [vmem:[%s1759_s4 + $0x8] sm:$0x3]  ;;  %v1069_v7 = vmov 1   ;;  %v178_v8 = vld [vmem:[%s1759_s4] sm:$0xff]  ;;  %v1763_v23 = vlaneseq }
   0x7   :  { %v32_v9 = vld [vmem:[%s1758_s3] sm:$0xff]  ;;  %v1154_v10 = vld [vmem:[%s1758_s3 + $0x8] sm:$0x3]  ;;  %v1070_v11 = vmov 2   ;;  %v1071_v12 = vmov 8   ;;  %v1072_v13 = vmov 3  }
   0x8   :  { %v1073_v14 = vmov 5   ;;  %v1074_v15 = vmov 4   ;;  %v1075_v16 = vmov 6   ;;  %v1076_v17 = vmov 7   ;;  %v1168_v18 = vld [vmem:[%s1760_s5] sm:$0x1] }
   0x9   :  { %44 = vperm.xlu0 %1009, %v36_v4   ;;  %54 = vperm.xlu1 %1010, %v31_v5   ;;  %v1077_v19 = vmov 9   ;;  %v1078_v20 = vmov 10   ;;  %v1079_v21 = vmov 11   ;;  %v680_v22 = vld [vmem:[#allocation2] sm:$0x1]  ;;  %v1189_v24 = vshrl.u32 %v1763_v23, 7 }
   0xa   :  { %v29_v29 = vld [vmem:[%s1755_s0] sm:$0xff]  ;;  %s1081_s0 = smov [#allocation3]  }
   0xb   :  { %1788 = vst [vmem:[#allocation6_spill] sm:$0xff] %v1189_v24  ;;  %v1193_v25 = vsub.s32 0, %v1189_v24  ;;  %v1196_v26 = vsub.s32 2, %v1189_v24  ;;  %v1199_v27 = vsub.s32 4, %v1189_v24  ;;  %v1202_v28 = vsub.s32 6, %v1189_v24  ;;  %s987_s17 = sshll.u32 %s1081_s0, 4  ;;  %s988_s17 = int_to_ptr.vmem [resolvable:$true] %s987_s17 }
   0xc   :  { %v1208_v30 = vsub.s32 1, %v1189_v24  ;;  %v1211_v31 = vsub.s32 3, %v1189_v24  ;;  %v1214_v32 = vsub.s32 5, %v1189_v24  ;;  %v1217_v33 = vsub.s32 7, %v1189_v24  ;;  %s1046_s18 = scalar_lea.vmem %s988_s17, 64  ;;  %p1051_p1 = scmp.lt.s32.totalorder %s988_s17, %s988_s17 }
   0xd   :  { %187 = vperm.xlu0 %1009, %v179_v6   ;;  %1011 = vset.pattern.permute.xlu1 %v1069_v7  ;;  %v61_v34 = vrot.slane %v29_v29, %v1193_v25  ;;  %v65_v35 = vrot.slane %v29_v29, %v1196_v26  ;;  %v69_v36 = vrot.slane %v29_v29, %v1199_v27  ;;  %p1047_p0 = scmp.ne.s32.totalorder %s988_s17, %s1046_s18  ;;  %p1052_p2 = scmp.lt.s32.totalorder %s1046_s18, %s1046_s18 }
   0xe   :  { %115 = vperm.xlu1 %1011, %v31_v5   ;;  %v73_v37 = vrot.slane %v29_v29, %v1202_v28  ;;  %v121_v40 = vrot.slane %v29_v29, %v1208_v30  ;;  %v125_v41 = vrot.slane %v29_v29, %v1211_v31  ;;  %v129_v42 = vrot.slane %v29_v29, %v1214_v32 }
   0xf   :  { %v133_v43 = vrot.slane %v29_v29, %v1217_v33  ;;  %v81_v44 = vrot.slane %v61_v34, %v1193_v25  ;;  %v85_v45 = vrot.slane %v65_v35, %v1193_v25  ;;  %v89_v46 = vrot.slane %v69_v36, %v1193_v25  ;;  %p1053_p3 = por %p1052_p2, %p1051_p1 }
  0x10   :  { %v93_v47 = vrot.slane %v73_v37, %v1193_v25  ;;  %v141_v54 = vrot.slane %v121_v40, %v1208_v30  ;;  %v145_v55 = vrot.slane %v125_v41, %v1208_v30  ;;  %v149_v56 = vrot.slane %v129_v42, %v1208_v30 }
  0x11   :  { %1013 = vset.pattern.permute.xlu0 %v1069_v7  ;;  %v153_v57 = vrot.slane %v133_v43, %v1208_v30  ;;  %p1054_p4 = pnand %p1053_p3, %p1047_p0 }
  0x12   :  { %111 = vperm.xlu0 %1013, %v30_v2   ;;  %1012 = vset.pattern.permute.xlu1 %v1068_v3 }
  0x13   :  { %182 = vperm.xlu1 %1012, %v178_v8  }
  0x16   :  { %233 = vperm.xlu0 %1013, %v32_v9  }
  0x17   :  { %192 = vperm.xlu1 %1012, %v32_v9  }
  0x1a   :  { %1016 = vset.pattern.permute.xlu0 %v1070_v11 }
  0x1b   :  { %277 = vperm.xlu0 %1016, %v1154_v10   ;;  %197 = vperm.xlu1 %1012, %v1154_v10  }
  0x1f   :  { %1021 = vset.pattern.permute.xlu0 %v1071_v12  ;;  %1014 = vset.pattern.permute.xlu1 %v1069_v7 }
  0x20   :  { %513 = vperm.xlu0 %1021, %v32_v9   ;;  %237 = vperm.xlu1 %1014, %v1154_v10  }
  0x24   :  { %1024 = vset.pattern.permute.xlu0 %v1072_v13  ;;  %1015 = vset.pattern.permute.xlu1 %v1070_v11 }
  0x25   :  { %317 = vperm.xlu0 %1024, %v1154_v10   ;;  %273 = vperm.xlu1 %1015, %v32_v9  }
  0x29   :  { %1025 = vset.pattern.permute.xlu0 %v1073_v14  ;;  %1017 = vset.pattern.permute.xlu1 %v1072_v13 }
  0x2a   :  { %393 = vperm.xlu0 %1025, %v32_v9   ;;  %313 = vperm.xlu1 %1017, %v32_v9  }
  0x2e   :  { %397 = vperm.xlu0 %1025, %v1154_v10   ;;  %1018 = vset.pattern.permute.xlu1 %v1074_v15 }
  0x2f   :  { %353 = vperm.xlu1 %1018, %v32_v9  }
  0x32   :  { %1030 = vset.pattern.permute.xlu0 %v1075_v16 }
  0x33   :  { %437 = vperm.xlu0 %1030, %v1154_v10   ;;  %1019 = vset.pattern.permute.xlu1 %v1075_v16 }
  0x34   :  { %433 = vperm.xlu1 %1019, %v32_v9  }
  0x37   :  { %1033 = vset.pattern.permute.xlu0 %v1076_v17 }
  0x38   :  { %477 = vperm.xlu0 %1033, %v1154_v10   ;;  %1020 = vset.pattern.permute.xlu1 %v1076_v17 }
  0x39   :  { %473 = vperm.xlu1 %1020, %v32_v9  }
  0x3c   :  { %1036 = vset.pattern.permute.xlu0 %v1074_v15 }
  0x3d   :  { %792 = vperm.xlu0 %1036, %v1168_v18   ;;  %1022 = vset.pattern.permute.xlu1 %v1077_v19 }
  0x3e   :  { %553 = vperm.xlu1 %1022, %v32_v9  }
  0x41   :  { %1039 = vset.pattern.permute.xlu0 %v1078_v20 }
  0x42   :  { %597 = vperm.xlu0 %1039, %v1154_v10   ;;  %1023 = vset.pattern.permute.xlu1 %v1078_v20 }
  0x43   :  { %593 = vperm.xlu1 %1023, %v32_v9  }
  0x46   :  { %1042 = vset.pattern.permute.xlu0 %v1076_v17 }
  0x47   :  { %1026 = vset.pattern.permute.xlu1 %v1079_v21  ;;  %876 = vperm.xlu0 %1042, %v1168_v18  }
  0x48   :  { %633 = vperm.xlu1 %1026, %v32_v9  }
  0x4b   :  { %1045 = vset.pattern.permute.xlu0 %v1077_v19 }
  0x4c   :  { %1027 = vset.pattern.permute.xlu1 %v1074_v15 }
  0x4d   :  { %357 = vperm.xlu1 %1027, %v1154_v10  }
  0x51   :  { %1028 = vset.pattern.permute.xlu1 %v1068_v3 }
  0x52   :  { %692 = vperm.xlu1 %1028, %v1168_v18  }
  0x56   :  { %1029 = vset.pattern.permute.xlu1 %v1069_v7 }
  0x57   :  { %708 = vperm.xlu1 %1029, %v1168_v18  }
  0x5b   :  { %1031 = vset.pattern.permute.xlu1 %v1068_v3 }
  0x5c   :  { %683 = vperm.xlu1 %1031, %v680_v22  }
  0x60   :  { %1032 = vset.pattern.permute.xlu1 %v1070_v11 }
  0x61   :  { %736 = vperm.xlu1 %1032, %v1168_v18  }
  0x65   :  { %1034 = vset.pattern.permute.xlu1 %v1072_v13 }
  0x66   :  { %764 = vperm.xlu1 %1034, %v1168_v18  }
  0x6a   :  { %1035 = vset.pattern.permute.xlu1 %v1071_v12 }
  0x6b   :  { %517 = vperm.xlu1 %1035, %v1154_v10  }
  0x6f   :  { %1037 = vset.pattern.permute.xlu1 %v1077_v19 }
  0x70   :  { %557 = vperm.xlu1 %1037, %v1154_v10  }
  0x74   :  { %1038 = vset.pattern.permute.xlu1 %v1073_v14 }
  0x75   :  { %820 = vperm.xlu1 %1038, %v1168_v18  }
  0x79   :  { %1040 = vset.pattern.permute.xlu1 %v1075_v16 }
  0x7a   :  { %848 = vperm.xlu1 %1040, %v1168_v18  }
  0x7e   :  { %1041 = vset.pattern.permute.xlu1 %v1079_v21 }
  0x7f   :  { %637 = vperm.xlu1 %1041, %v1154_v10  }
  0x80   :  { %v50_v38 = vpop.permute.xlu1 %49  ;;  %v40_v39 = vpop.permute.xlu0 %39 }
  0x81   :  { %v94_v13 = vmul.f32 %v81_v44, %v50_v38  ;;  %v95_v14 = vmul.f32 %v85_v45, %v50_v38  ;;  %v96_v15 = vmul.f32 %v89_v46, %v50_v38  ;;  %v97_v16 = vmul.f32 %v93_v47, %v50_v38 }
  0x83   :  { %1043 = vset.pattern.permute.xlu1 %v1071_v12  ;;  %v102_v22 = vadd.f32 %v94_v13, %v40_v39  ;;  %v103_v29 = vadd.f32 %v95_v14, %v40_v39  ;;  %v104_v34 = vadd.f32 %v96_v15, %v40_v39  ;;  %v105_v35 = vadd.f32 %v97_v16, %v40_v39 }
  0x84   :  { %904 = vperm.xlu1 %1043, %v1168_v18   ;;  %v55_v48 = vpop.permute.xlu1 %54  ;;  %v45_v53 = vpop.permute.xlu0 %44 }
  0x85   :  { %v98_v49 = vmul.f32 %v81_v44, %v55_v48  ;;  %v99_v50 = vmul.f32 %v85_v45, %v55_v48  ;;  %v100_v51 = vmul.f32 %v89_v46, %v55_v48  ;;  %v101_v52 = vmul.f32 %v93_v47, %v55_v48 }
  0x87   :  { %v106_v58 = vadd.f32 %v98_v49, %v45_v53  ;;  %v107_v60 = vadd.f32 %v99_v50, %v45_v53  ;;  %v108_v61 = vadd.f32 %v100_v51, %v45_v53  ;;  %v109_v62 = vadd.f32 %v101_v52, %v45_v53 }
  0x88   :  { %1044 = vset.pattern.permute.xlu1 %v1077_v19  ;;  %v1242_v9 = vpop.permute.xlu0 %187 }
  0x89   :  { %920 = vperm.xlu1 %1044, %v1168_v18   ;;  %v116_v59 = vpop.permute.xlu1 %115 }
  0x8a   :  { %v158_v63 = vmul.f32 %v141_v54, %v116_v59  ;;  %v159_v0 = vmul.f32 %v145_v55, %v116_v59  ;;  %v160_v1 = vmul.f32 %v149_v56, %v116_v59  ;;  %v161_v2 = vmul.f32 %v153_v57, %v116_v59 }
  0x8c   :  { %v166_v3 = vadd.f32 %v158_v63, %v106_v58  ;;  %v167_v4 = vadd.f32 %v159_v0, %v107_v60  ;;  %v168_v5 = vadd.f32 %v160_v1, %v108_v61  ;;  %v169_v6 = vadd.f32 %v161_v2, %v109_v62 }
  0x8d   :  { %v112_v12 = vpop.permute.xlu0 %111 }
  0x8e   :  { %v1240_v7 = vpop.permute.xlu1 %182  ;;  %v154_v17 = vmul.f32 %v141_v54, %v112_v12  ;;  %v155_v18 = vmul.f32 %v145_v55, %v112_v12  ;;  %v156_v19 = vmul.f32 %v149_v56, %v112_v12  ;;  %v157_v21 = vmul.f32 %v153_v57, %v112_v12 }
  0x8f   :  { %v174_v46 = vmax.f32 %v166_v3, 0.0  ;;  %v175_v48 = vmax.f32 %v167_v4, 0.0  ;;  %v1260_v49 = vmax.f32 %v168_v5, 0.0  ;;  %v1262_v39 = vmax.f32 %v169_v6, 0.0 }
  0x90   :  { %v162_v36 = vadd.f32 %v154_v17, %v102_v22  ;;  %v163_v37 = vadd.f32 %v155_v18, %v103_v29  ;;  %v164_v40 = vadd.f32 %v156_v19, %v104_v34  ;;  %v165_v42 = vadd.f32 %v157_v21, %v105_v35 }
  0x91   :  { %v234_v41 = vpop.permute.xlu0 %233  ;;  %v1281_v55 = vrot.slane %v174_v46, %v1208_v30  ;;  %v1288_v57 = vrot.slane %v175_v48, %v1208_v30  ;;  %v1292_v58 = vrot.slane %v1260_v49, %v1208_v30  ;;  %v1296_v59 = vrot.slane %v1262_v39, %v1208_v30 }
  0x92   :  { %v193_v8 = vpop.permute.xlu1 %192  ;;  %v1252_v44 = vmax.f32 %v162_v36, 0.0  ;;  %v1254_v38 = vmax.f32 %v163_v37, 0.0  ;;  %v1256_v45 = vmax.f32 %v164_v40, 0.0  ;;  %v1258_v47 = vmax.f32 %v165_v42, 0.0 }
  0x93   :  { %1789 = vst [vmem:[#allocation7_spill] sm:$0xff] %v1288_v57  ;;  %1790 = vst [vmem:[#allocation8_spill] sm:$0xff] %v1292_v58  ;;  %v1299_v60 = vrot.slane %v174_v46, %v1196_v26  ;;  %v1302_v61 = vrot.slane %v175_v48, %v1196_v26  ;;  %v1306_v62 = vrot.slane %v1260_v49, %v1196_v26 }
  0x94   :  { %v1270_v52 = vrot.slane %v1252_v44, %v1193_v25  ;;  %v1274_v53 = vrot.slane %v1254_v38, %v1193_v25  ;;  %v1278_v54 = vrot.slane %v1256_v45, %v1193_v25  ;;  %v1285_v56 = vrot.slane %v1258_v47, %v1193_v25  ;;  %1791 = vst [vmem:[#allocation9_spill] sm:$0xff] %v1296_v59 }
  0x95   :  { %1792 = vst [vmem:[#allocation10_spill] sm:$0xff] %v1299_v60  ;;  %1793 = vst [vmem:[#allocation11_spill] sm:$0xff] %v1302_v61  ;;  %v1310_v63 = vrot.slane %v1262_v39, %v1196_v26  ;;  %v1313_v0 = vrot.slane %v174_v46, %v1211_v31  ;;  %v1318_v2 = vrot.slane %v175_v48, %v1211_v31 }
  0x96   :  { %v1244_v10 = vpop.permute.xlu1 %197  ;;  %v1264_v50 = vpop.permute.xlu0 %277  ;;  %1794 = vst [vmem:[#allocation12_spill] sm:$0xff] %v1306_v62  ;;  %v216_v3 = vmul.f32 %v1270_v52, %v193_v8  ;;  %v217_v4 = vmul.f32 %v1274_v53, %v193_v8  ;;  %v218_v5 = vmul.f32 %v1278_v54, %v193_v8  ;;  %v1327_v12 = vrot.slane %v1260_v49, %v1211_v31 }
  0x97   :  { %1795 = vst [vmem:[#allocation13_spill] sm:$0xff] %v1310_v63  ;;  %1796 = vst [vmem:[#allocation14_spill] sm:$0xff] %v1313_v0  ;;  %v219_v13 = vmul.f32 %v1285_v56, %v193_v8  ;;  %v1332_v14 = vrot.slane %v1252_v44, %v1208_v30  ;;  %v1336_v15 = vrot.slane %v1254_v38, %v1208_v30 }
  0x98   :  { %1797 = vst [vmem:[#allocation15_spill] sm:$0xff] %v1318_v2  ;;  %1798 = vst [vmem:[#allocation16_spill] sm:$0xff] %v1327_v12  ;;  %v1340_v16 = vrot.slane %v1262_v39, %v1211_v31  ;;  %v1343_v17 = vrot.slane %v174_v46, %v1193_v25  ;;  %v1346_v18 = vrot.slane %v175_v48, %v1193_v25 }
  0x99   :  { %v1350_v8 = vrot.slane %v1256_v45, %v1208_v30  ;;  %v1354_v19 = vrot.slane %v1252_v44, %v1199_v27  ;;  %v1358_v21 = vrot.slane %v1254_v38, %v1199_v27  ;;  %v1362_v22 = vrot.slane %v1256_v45, %v1199_v27 }
  0x9a   :  { %1799 = vst [vmem:[#allocation17_spill] sm:$0xff] %v1340_v16  ;;  %v1366_v29 = vrot.slane %v1258_v47, %v1208_v30  ;;  %v224_v34 = vadd.f32 %v216_v3, %v1240_v7  ;;  %v225_v35 = vadd.f32 %v217_v4, %v1240_v7  ;;  %v226_v36 = vadd.f32 %v218_v5, %v1240_v7 }
  0x9b   :  { %v1246_v11 = vpop.permute.xlu1 %237  ;;  %v1323_v6 = vpop.permute.xlu0 %513  ;;  %1800 = vst [vmem:[#allocation18_spill] sm:$0xff] %v1362_v22  ;;  %v1373_v37 = vrot.slane %v1252_v44, %v1196_v26  ;;  %v227_v42 = vadd.f32 %v219_v13, %v1240_v7  ;;  %v256_v46 = vmul.f32 %v1332_v14, %v234_v41  ;;  %v257_v48 = vmul.f32 %v1336_v15, %v234_v41 }
  0x9c   :  { %v1382_v30 = vrot.slane %v1254_v38, %v1196_v26  ;;  %v258_v3 = vmul.f32 %v1350_v8, %v234_v41  ;;  %v1387_v4 = vrot.slane %v1256_v45, %v1196_v26  ;;  %v1393_v7 = vrot.slane %v1252_v44, %v1211_v31 }
  0x9d   :  { %v259_v23 = vmul.f32 %v1366_v29, %v234_v41  ;;  %v1400_v24 = vrot.slane %v1258_v47, %v1196_v26  ;;  %v1406_v12 = vrot.slane %v1254_v38, %v1211_v31  ;;  %v264_v2 = vadd.f32 %v256_v46, %v224_v34 }
  0x9e   :  { %1801 = vst [vmem:[#allocation19_spill] sm:$0xff] %v1393_v7  ;;  %v1412_v63 = vrot.slane %v1256_v45, %v1211_v31  ;;  %v265_v26 = vadd.f32 %v257_v48, %v225_v35  ;;  %v1420_v61 = vrot.slane %v1258_v47, %v1211_v31 }
  0x9f   :  { %1803 = vst [vmem:[#allocation21_spill] sm:$0xff] %v1406_v12  ;;  %v267_v48 = vadd.f32 %v259_v23, %v227_v42  ;;  %v1442_v23 = vrot.slane %v1260_v49, %v1193_v25  ;;  %v220_v49 = vmul.f32 %v1270_v52, %v1244_v10  ;;  %v221_v52 = vmul.f32 %v1274_v53, %v1244_v10 }
  0xa0   :  { %v1248_v20 = vpop.permute.xlu1 %273  ;;  %v1395_v13 = vpop.permute.xlu0 %317  ;;  %v1486_v53 = vrot.slane %v1254_v38, %v1202_v28 }
  0xa1   :  { %v296_v5 = vmul.f32 %v1373_v37, %v1248_v20  ;;  %1802 = vst [vmem:[#allocation20_spill] sm:$0xff] %v1395_v13  ;;  %v297_v16 = vmul.f32 %v1382_v30, %v1248_v20  ;;  %v298_v0 = vmul.f32 %v1387_v4, %v1248_v20  ;;  %v299_v62 = vmul.f32 %v1400_v24, %v1248_v20 }
  0xa2   :  { %v266_v13 = vadd.f32 %v258_v3, %v226_v36  ;;  %1805 = vst [vmem:[#allocation23_spill] sm:$0xff] %v1486_v53 }
  0xa3   :  { %v304_v60 = vadd.f32 %v296_v5, %v264_v2 }
  0xa4   :  { %v306_v36 = vadd.f32 %v298_v0, %v266_v13 }
  0xa5   :  { %v1250_v43 = vpop.permute.xlu1 %313  ;;  %v394_v5 = vpop.permute.xlu0 %393 }
  0xa6   :  { %v336_v41 = vmul.f32 %v1393_v7, %v1250_v43  ;;  %v337_v34 = vmul.f32 %v1406_v12, %v1250_v43  ;;  %v338_v59 = vmul.f32 %v1412_v63, %v1250_v43  ;;  %v305_v7 = vadd.f32 %v297_v16, %v265_v26 }
  0xa7   :  { %v339_v20 = vmul.f32 %v1420_v61, %v1250_v43  ;;  %v1436_v12 = vrot.slane %v1258_v47, %v1199_v27  ;;  %v1446_v43 = vrot.slane %v1262_v39, %v1193_v25  ;;  %v307_v16 = vadd.f32 %v299_v62, %v267_v48 }
  0xa8   :  { %v344_v2 = vadd.f32 %v336_v41, %v304_v60  ;;  %v345_v42 = vadd.f32 %v337_v34, %v305_v7  ;;  %v346_v26 = vadd.f32 %v338_v59, %v306_v36  ;;  %v1452_v60 = vrot.slane %v1252_v44, %v1214_v32 }
  0xa9   :  { %v347_v41 = vadd.f32 %v339_v20, %v307_v16  ;;  %v1460_v39 = vrot.slane %v1254_v38, %v1214_v32  ;;  %v1468_v62 = vrot.slane %v1258_v47, %v1214_v32  ;;  %v222_v34 = vmul.f32 %v1278_v54, %v1244_v10  ;;  %v1492_v54 = vpop.permute.xlu0 %397 }
  0xaa   :  { %v1266_v51 = vpop.permute.xlu1 %353  ;;  %v416_v7 = vmul.f32 %v1452_v60, %v394_v5 }
  0xab   :  { %v376_v35 = vmul.f32 %v1354_v19, %v1266_v51  ;;  %v377_v31 = vmul.f32 %v1358_v21, %v1266_v51  ;;  %v378_v3 = vmul.f32 %v1362_v22, %v1266_v51  ;;  %v379_v27 = vmul.f32 %v1436_v12, %v1266_v51 }
  0xac   :  { %v1464_v51 = vrot.slane %v1256_v45, %v1214_v32  ;;  %v417_v48 = vmul.f32 %v1460_v39, %v394_v5  ;;  %v419_v36 = vmul.f32 %v1468_v62, %v394_v5 }
  0xad   :  { %v384_v0 = vadd.f32 %v376_v35, %v344_v2  ;;  %v385_v22 = vadd.f32 %v377_v31, %v345_v42  ;;  %v386_v59 = vadd.f32 %v378_v3, %v346_v26  ;;  %v223_v35 = vmul.f32 %v1285_v56, %v1244_v10 }
  0xae   :  { %v387_v20 = vadd.f32 %v379_v27, %v347_v41  ;;  %v418_v31 = vmul.f32 %v1464_v51, %v394_v5  ;;  %v1482_v3 = vrot.slane %v1252_v44, %v1202_v28  ;;  %v1490_v10 = vrot.slane %v1256_v45, %v1202_v28 }
  0xaf   :  { %v1315_v1 = vpop.permute.xlu1 %433  ;;  %v424_v32 = vadd.f32 %v416_v7, %v384_v0  ;;  %v425_v2 = vadd.f32 %v417_v48, %v385_v22  ;;  %v1498_v22 = vrot.slane %v1258_v47, %v1202_v28  ;;  %v1502_v5 = vrot.slane %v1252_v44, %v1217_v33 }
  0xb0   :  { %1804 = vst [vmem:[#allocation22_spill] sm:$0xff] %v1482_v3  ;;  %1806 = vst [vmem:[#allocation24_spill] sm:$0xff] %v1490_v10  ;;  %v426_v16 = vadd.f32 %v418_v31, %v386_v59  ;;  %v1506_v42 = vrot.slane %v1254_v38, %v1217_v33  ;;  %v456_v26 = vmul.f32 %v1482_v3, %v1315_v1 }
  0xb1   :  { %1807 = vst [vmem:[#allocation25_spill] sm:$0xff] %v1498_v22  ;;  %1808 = vst [vmem:[#allocation26_spill] sm:$0xff] %v1502_v5  ;;  %v457_v27 = vmul.f32 %v1486_v53, %v1315_v1  ;;  %v458_v0 = vmul.f32 %v1490_v10, %v1315_v1  ;;  %v1516_v28 = vrot.slane %v1256_v45, %v1217_v33 }
  0xb2   :  { %1809 = vst [vmem:[#allocation27_spill] sm:$0xff] %v1506_v42  ;;  %v260_v44 = vmul.f32 %v1332_v14, %v1246_v11  ;;  %v427_v41 = vadd.f32 %v419_v36, %v387_v20  ;;  %v459_v38 = vmul.f32 %v1498_v22, %v1315_v1  ;;  %v1524_v59 = vrot.slane %v1258_v47, %v1217_v33  ;;  %v1544_v22 = vpop.permute.xlu0 %437 }
  0xb3   :  { %1810 = vst [vmem:[#allocation28_spill] sm:$0xff] %v1516_v28  ;;  %v261_v7 = vmul.f32 %v1336_v15, %v1246_v11  ;;  %v228_v20 = vadd.f32 %v220_v49, %v1242_v9  ;;  %v262_v1 = vmul.f32 %v1350_v8, %v1246_v11  ;;  %v263_v33 = vmul.f32 %v1366_v29, %v1246_v11 }
  0xb4   :  { %v1375_v40 = vpop.permute.xlu1 %473  ;;  %1811 = vst [vmem:[#allocation29_spill] sm:$0xff] %v1524_v59  ;;  %v229_v31 = vadd.f32 %v221_v52, %v1242_v9  ;;  %v464_v36 = vadd.f32 %v456_v26, %v424_v32  ;;  %v230_v49 = vadd.f32 %v222_v34, %v1242_v9  ;;  %v467_v10 = vadd.f32 %v459_v38, %v427_v41 }
  0xb5   :  { %v496_v48 = vmul.f32 %v1502_v5, %v1375_v40  ;;  %v497_v45 = vmul.f32 %v1506_v42, %v1375_v40  ;;  %v498_v14 = vmul.f32 %v1516_v28, %v1375_v40  ;;  %v499_v47 = vmul.f32 %v1524_v59, %v1375_v40 }
  0xb6   :  { %v465_v42 = vadd.f32 %v457_v27, %v425_v2  ;;  %v466_v5 = vadd.f32 %v458_v0, %v426_v16  ;;  %v231_v28 = vadd.f32 %v223_v35, %v1242_v9  ;;  %v268_v8 = vadd.f32 %v260_v44, %v228_v20  ;;  %v1812_v44 = vld [vmem:[#allocation9_spill] sm:$0xff]  ;;  %v1814_v20 = vld [vmem:[#allocation20_spill] sm:$0xff] }
  0xb7   :  { %v269_v53 = vadd.f32 %v261_v7, %v229_v31  ;;  %v504_v11 = vadd.f32 %v496_v48, %v464_v36  ;;  %v270_v40 = vadd.f32 %v262_v1, %v230_v49  ;;  %v300_v52 = vmul.f32 %v1373_v37, %v1264_v50  ;;  %v1815_v1 = vld [vmem:[#allocation19_spill] sm:$0xff]  ;;  %v1817_v31 = vld [vmem:[#allocation12_spill] sm:$0xff] }
  0xb8   :  { %v505_v29 = vadd.f32 %v497_v45, %v465_v42  ;;  %v506_v3 = vadd.f32 %v498_v14, %v466_v5  ;;  %v271_v59 = vadd.f32 %v263_v33, %v231_v28  ;;  %v507_v32 = vadd.f32 %v499_v47, %v467_v10  ;;  %v1570_v28 = vpop.permute.xlu0 %477 }
  0xb9   :  { %v1424_v46 = vpop.permute.xlu1 %553  ;;  %v301_v2 = vmul.f32 %v1382_v30, %v1264_v50  ;;  %v536_v34 = vmul.f32 %v1343_v17, %v1323_v6  ;;  %v537_v9 = vmul.f32 %v1346_v18, %v1323_v6  ;;  %v538_v35 = vmul.f32 %v1442_v23, %v1323_v6 }
  0xba   :  { %v576_v16 = vmul.f32 %v1281_v55, %v1424_v46  ;;  %v577_v5 = vmul.f32 %v1288_v57, %v1424_v46  ;;  %v302_v30 = vmul.f32 %v1387_v4, %v1264_v50  ;;  %v539_v10 = vmul.f32 %v1446_v43, %v1323_v6  ;;  %v1813_v4 = vld [vmem:[#allocation10_spill] sm:$0xff] }
  0xbb   :  { %v578_v42 = vmul.f32 %v1292_v58, %v1424_v46  ;;  %v544_v26 = vadd.f32 %v536_v34, %v504_v11  ;;  %v545_v27 = vadd.f32 %v537_v9, %v505_v29  ;;  %v546_v0 = vadd.f32 %v538_v35, %v506_v3  ;;  %v1816_v3 = vld [vmem:[#allocation11_spill] sm:$0xff]  ;;  %v1822_v9 = vld [vmem:[#allocation16_spill] sm:$0xff] }
  0xbc   :  { %v579_v41 = vmul.f32 %v1812_v44, %v1424_v46  ;;  %v303_v38 = vmul.f32 %v1400_v24, %v1264_v50  ;;  %v308_v7 = vadd.f32 %v300_v52, %v268_v8  ;;  %v547_v48 = vadd.f32 %v539_v10, %v507_v32  ;;  %v1818_v46 = vld [vmem:[#allocation13_spill] sm:$0xff]  ;;  %v1820_v8 = vld [vmem:[#allocation14_spill] sm:$0xff]  ;;  %v793_v32 = vpop.permute.xlu0 %792 }
  0xbd   :  { %v309_v6 = vadd.f32 %v301_v2, %v269_v53  ;;  %v310_v14 = vadd.f32 %v302_v30, %v270_v40  ;;  %v340_v33 = vmul.f32 %v1815_v1, %v1814_v20  ;;  %v1819_v24 = vld [vmem:[#allocation21_spill] sm:$0xff]  ;;  %v584_v29 = vadd.f32 %v576_v16, %v544_v26  ;;  %v1821_v2 = vld [vmem:[#allocation15_spill] sm:$0xff] }
  0xbe   :  { %v1454_v13 = vpop.permute.xlu1 %593  ;;  %v341_v50 = vmul.f32 %v1819_v24, %v1814_v20  ;;  %v585_v40 = vadd.f32 %v577_v5, %v545_v27  ;;  %v586_v52 = vadd.f32 %v578_v42, %v546_v0  ;;  %v1823_v30 = vld [vmem:[#allocation17_spill] sm:$0xff]  ;;  %v587_v10 = vadd.f32 %v579_v41, %v547_v48 }
  0xbf   :  { %v616_v45 = vmul.f32 %v1813_v4, %v1454_v13  ;;  %v617_v47 = vmul.f32 %v1816_v3, %v1454_v13  ;;  %v618_v36 = vmul.f32 %v1817_v31, %v1454_v13  ;;  %v619_v49 = vmul.f32 %v1818_v46, %v1454_v13 }
  0xc0   :  { %v311_v1 = vadd.f32 %v303_v38, %v271_v59  ;;  %v342_v24 = vmul.f32 %v1412_v63, %v1814_v20  ;;  %v343_v16 = vmul.f32 %v1420_v61, %v1814_v20  ;;  %v348_v0 = vadd.f32 %v340_v33, %v308_v7  ;;  %v598_v61 = vpop.permute.xlu0 %597  ;;  %v1824_v38 = vld [vmem:[#allocation18_spill] sm:$0xff] }
  0xc1   :  { %v624_v5 = vadd.f32 %v616_v45, %v584_v29  ;;  %v625_v42 = vadd.f32 %v617_v47, %v585_v40  ;;  %v626_v26 = vadd.f32 %v618_v36, %v586_v52  ;;  %v627_v27 = vadd.f32 %v619_v49, %v587_v10  ;;  %v1825_v33 = vld [vmem:[#allocation22_spill] sm:$0xff]  ;;  %v1828_v52 = vld [vmem:[#allocation25_spill] sm:$0xff] }
  0xc2   :  { %v349_v44 = vadd.f32 %v341_v50, %v309_v6  ;;  %v350_v59 = vadd.f32 %v342_v24, %v310_v14  ;;  %v351_v41 = vadd.f32 %v343_v16, %v311_v1  ;;  %v420_v45 = vmul.f32 %v1452_v60, %v1492_v54  ;;  %v1826_v50 = vld [vmem:[#allocation23_spill] sm:$0xff] }
  0xc3   :  { %v1494_v56 = vpop.permute.xlu1 %633  ;;  %v421_v6 = vmul.f32 %v1460_v39, %v1492_v54  ;;  %v423_v14 = vmul.f32 %v1468_v62, %v1492_v54  ;;  %v460_v47 = vmul.f32 %v1825_v33, %v1544_v22  ;;  %v1645_v1 = vmul.f32 %v1813_v4, %v598_v61 }
  0xc4   :  { %v656_v11 = vmul.f32 %v1820_v8, %v1494_v56  ;;  %v657_v34 = vmul.f32 %v1821_v2, %v1494_v56  ;;  %v658_v35 = vmul.f32 %v1822_v9, %v1494_v56  ;;  %v659_v13 = vmul.f32 %v1823_v30, %v1494_v56 }
  0xc6   :  { %v664_v2 = vadd.f32 %v656_v11, %v624_v5  ;;  %v665_v9 = vadd.f32 %v657_v34, %v625_v42  ;;  %v666_v58 = vadd.f32 %v658_v35, %v626_v26  ;;  %v667_v57 = vadd.f32 %v659_v13, %v627_v27  ;;  %v1827_v11 = vld [vmem:[#allocation24_spill] sm:$0xff]  ;;  %v1832_v35 = vld [vmem:[#allocation29_spill] sm:$0xff] }
  0xc7   :  { %v462_v62 = vmul.f32 %v1827_v11, %v1544_v22  ;;  %v503_v13 = vmul.f32 %v1832_v35, %v1570_v28 }
  0xc8   :  { %v1541_v15 = vpop.permute.xlu1 %357  ;;  %v1617_v20 = vmax.f32 %v664_v2, 0.0  ;;  %v1625_v60 = vmax.f32 %v667_v57, 0.0  ;;  %v1830_v57 = vld [vmem:[#allocation27_spill] sm:$0xff] }
  0xc9   :  { %v380_v56 = vmul.f32 %v1354_v19, %v1541_v15  ;;  %v381_v63 = vmul.f32 %v1358_v21, %v1541_v15  ;;  %v382_v48 = vmul.f32 %v1824_v38, %v1541_v15  ;;  %v383_v7 = vmul.f32 %v1436_v12, %v1541_v15 }
  0xca   :  { %v798_v19 = vrot.slane %v793_v32, %v1193_v25  ;;  %v422_v21 = vmul.f32 %v1464_v51, %v1492_v54  ;;  %v1621_v12 = vmax.f32 %v665_v9, 0.0  ;;  %v1623_v15 = vmax.f32 %v666_v58, 0.0  ;;  %v877_v54 = vpop.permute.xlu0 %876  ;;  %v1829_v58 = vld [vmem:[#allocation26_spill] sm:$0xff] }
  0xcb   :  { %v388_v36 = vadd.f32 %v380_v56, %v348_v0  ;;  %v389_v49 = vadd.f32 %v381_v63, %v349_v44  ;;  %v461_v51 = vmul.f32 %v1826_v50, %v1544_v22  ;;  %v390_v29 = vadd.f32 %v382_v48, %v350_v59  ;;  %v1831_v44 = vld [vmem:[#allocation28_spill] sm:$0xff] }
  0xcc   :  { %v391_v40 = vadd.f32 %v383_v7, %v351_v41  ;;  %v463_v32 = vmul.f32 %v1828_v52, %v1544_v22  ;;  %v500_v2 = vmul.f32 %v1829_v58, %v1570_v28  ;;  %v501_v34 = vmul.f32 %v1830_v57, %v1570_v28 }
  0xcd   :  { %v1562_v37 = vpop.permute.xlu1 %692  ;;  %v502_v9 = vmul.f32 %v1831_v44, %v1570_v28  ;;  %v1642_v10 = vmul.f32 %v798_v19, %v1617_v20  ;;  %v1648_v22 = vmul.f32 %v798_v19, %v1621_v12  ;;  %v1651_v24 = vmul.f32 %v798_v19, %v1623_v15 }
  0xce   :  { %v1654_v16 = vmul.f32 %v798_v19, %v1625_v60  ;;  %v1657_v5 = vrot.slane %v877_v54, %v1193_v25  ;;  %v428_v42 = vadd.f32 %v420_v45, %v388_v36  ;;  %v429_v26 = vadd.f32 %v421_v6, %v389_v49 }
  0xcf   :  { %v698_v4 = vrot.slane %v1562_v37, %v1193_v25  ;;  %v430_v56 = vadd.f32 %v422_v21, %v390_v29  ;;  %v431_v63 = vadd.f32 %v423_v14, %v391_v40  ;;  %v1664_v59 = vmul.f32 %v1816_v3, %v598_v61 }
  0xd0   :  { %v1667_v41 = vmul.f32 %v1817_v31, %v598_v61  ;;  %v1670_v38 = vmul.f32 %v1818_v46, %v598_v61  ;;  %v808_v37 = vrot.slane %v1648_v22, 4  ;;  %v468_v6 = vadd.f32 %v460_v47, %v428_v42 }
  0xd1   :  { %v469_v19 = vadd.f32 %v461_v51, %v429_v26  ;;  %v1680_v31 = vmul.f32 %v1657_v5, %v1617_v20  ;;  %v470_v46 = vadd.f32 %v462_v62, %v430_v56  ;;  %v471_v61 = vadd.f32 %v463_v32, %v431_v63 }
  0xd2   :  { %v709_v53 = vpop.permute.xlu1 %708  ;;  %v699_v21 = vmul.f32 %v698_v4, %v1617_v20  ;;  %v700_v33 = vmul.f32 %v698_v4, %v1621_v12  ;;  %v702_v50 = vmul.f32 %v698_v4, %v1625_v60  ;;  %v508_v44 = vadd.f32 %v500_v2, %v468_v6 }
  0xd3   :  { %v714_v28 = vrot.slane %v709_v53, %v1193_v25  ;;  %v807_v53 = vrot.slane %v1642_v10, 4  ;;  %v509_v35 = vadd.f32 %v501_v34, %v469_v19 }
  0xd5   :  { %v715_v3 = vmul.f32 %v714_v28, %v1617_v20  ;;  %v716_v47 = vmul.f32 %v714_v28, %v1621_v12  ;;  %v717_v36 = vmul.f32 %v714_v28, %v1623_v15  ;;  %v718_v11 = vmul.f32 %v714_v28, %v1625_v60 }
  0xd7   :  { %v684_v8 = vpop.permute.xlu1 %683  ;;  %v723_v29 = vrot.slane %v715_v3, 1  ;;  %v724_v42 = vrot.slane %v716_v47, 1  ;;  %v725_v26 = vrot.slane %v717_v36, 1  ;;  %v726_v56 = vrot.slane %v718_v11, 1  ;;  %v1834_v36 = vld [vmem:[#allocation8_spill] sm:$0xff] }
  0xd8   :  { %v689_v48 = vrot.slane %v684_v8, %v1193_v25 }
  0xda   :  { %v703_v51 = vadd.f32 %v699_v21, %v689_v48  ;;  %v704_v62 = vadd.f32 %v700_v33, %v689_v48  ;;  %v706_v52 = vadd.f32 %v702_v50, %v689_v48  ;;  %v511_v21 = vadd.f32 %v503_v13, %v471_v61 }
  0xdc   :  { %v737_v39 = vpop.permute.xlu1 %736  ;;  %v731_v63 = vadd.f32 %v723_v29, %v703_v51  ;;  %v732_v3 = vadd.f32 %v724_v42, %v704_v62 }
  0xdd   :  { %v742_v27 = vrot.slane %v737_v39, %v1193_v25  ;;  %v701_v39 = vmul.f32 %v698_v4, %v1623_v15  ;;  %v510_v4 = vadd.f32 %v502_v9, %v470_v46 }
  0xdf   :  { %v743_v8 = vmul.f32 %v742_v27, %v1617_v20  ;;  %v705_v54 = vadd.f32 %v701_v39, %v689_v48  ;;  %v744_v40 = vmul.f32 %v742_v27, %v1621_v12  ;;  %v745_v32 = vmul.f32 %v742_v27, %v1623_v15 }
  0xe0   :  { %v746_v58 = vmul.f32 %v742_v27, %v1625_v60  ;;  %v734_v48 = vadd.f32 %v726_v56, %v706_v52 }
  0xe1   :  { %v765_v0 = vpop.permute.xlu1 %764  ;;  %v751_v57 = vrot.slane %v743_v8, 2  ;;  %v733_v33 = vadd.f32 %v725_v26, %v705_v54  ;;  %v752_v39 = vrot.slane %v744_v40, 2  ;;  %v753_v50 = vrot.slane %v745_v32, 2  ;;  %v1833_v8 = vld [vmem:[#allocation7_spill] sm:$0xff] }
  0xe2   :  { %v770_v49 = vrot.slane %v765_v0, %v1193_v25  ;;  %v754_v45 = vrot.slane %v746_v58, 2 }
  0xe3   :  { %v759_v7 = vadd.f32 %v751_v57, %v731_v63  ;;  %v760_v11 = vadd.f32 %v752_v39, %v732_v3  ;;  %v761_v54 = vadd.f32 %v753_v50, %v733_v33 }
  0xe4   :  { %v771_v28 = vmul.f32 %v770_v49, %v1617_v20  ;;  %v772_v9 = vmul.f32 %v770_v49, %v1621_v12  ;;  %v773_v19 = vmul.f32 %v770_v49, %v1623_v15  ;;  %v774_v13 = vmul.f32 %v770_v49, %v1625_v60 }
  0xe5   :  { %v762_v29 = vadd.f32 %v754_v45, %v734_v48 }
  0xe6   :  { %v518_v14 = vpop.permute.xlu1 %517  ;;  %v779_v46 = vrot.slane %v771_v28, 3  ;;  %v780_v52 = vrot.slane %v772_v9, 3  ;;  %v781_v32 = vrot.slane %v773_v19, 3  ;;  %v782_v58 = vrot.slane %v774_v13, 3 }
  0xe7   :  { %v540_v27 = vmul.f32 %v1343_v17, %v518_v14  ;;  %v541_v2 = vmul.f32 %v1346_v18, %v518_v14  ;;  %v542_v34 = vmul.f32 %v1442_v23, %v518_v14  ;;  %v543_v6 = vmul.f32 %v1446_v43, %v518_v14  ;;  %v1835_v18 = vld [vmem:[#allocation9_spill] sm:$0xff] }
  0xe8   :  { %v789_v33 = vadd.f32 %v781_v32, %v761_v54  ;;  %v790_v39 = vadd.f32 %v782_v58, %v762_v29  ;;  %v1080_v58 = vmov 1966171168  }
  0xe9   :  { %v548_v43 = vadd.f32 %v540_v27, %v508_v44  ;;  %v549_v14 = vadd.f32 %v541_v2, %v509_v35  ;;  %v550_v40 = vadd.f32 %v542_v34, %v510_v4  ;;  %v551_v49 = vadd.f32 %v543_v6, %v511_v21 }
  0xea   :  { %v1714_v35 = vmul.f32 %v1657_v5, %v1621_v12  ;;  %v1722_v4 = vmul.f32 %v1657_v5, %v1625_v60  ;;  %v788_v21 = vadd.f32 %v780_v52, %v760_v11 }
  0xeb   :  { %v558_v0 = vpop.permute.xlu1 %557 }
  0xec   :  { %v580_v61 = vmul.f32 %v1281_v55, %v558_v0  ;;  %v581_v47 = vmul.f32 %v1833_v8, %v558_v0  ;;  %v582_v51 = vmul.f32 %v1834_v36, %v558_v0  ;;  %v583_v62 = vmul.f32 %v1835_v18, %v558_v0 }
  0xed   :  { %v787_v55 = vadd.f32 %v779_v46, %v759_v7  ;;  %v1718_v7 = vmul.f32 %v1657_v5, %v1623_v15 }
  0xee   :  { %v588_v57 = vadd.f32 %v580_v61, %v548_v43  ;;  %v589_v42 = vadd.f32 %v581_v47, %v549_v14  ;;  %v590_v26 = vadd.f32 %v582_v51, %v550_v40  ;;  %v591_v28 = vadd.f32 %v583_v62, %v551_v49 }
  0xef   :  { %v815_v48 = vadd.f32 %v807_v53, %v787_v55  ;;  %v816_v51 = vadd.f32 %v808_v37, %v788_v21  ;;  %v954_v55 = vunpack.c.l.s4 %v1080_v58 }
  0xf0   :  { %v821_v17 = vpop.permute.xlu1 %820  ;;  %v628_v50 = vadd.f32 %v1645_v1, %v588_v57  ;;  %v629_v27 = vadd.f32 %v1664_v59, %v589_v42  ;;  %v630_v2 = vadd.f32 %v1667_v41, %v590_v26  ;;  %v631_v9 = vadd.f32 %v1670_v38, %v591_v28  ;;  %v1836_v1 = vld [vmem:[#allocation14_spill] sm:$0xff]  ;;  %v1837_v59 = vld [vmem:[#allocation15_spill] sm:$0xff]  ;;  %v1838_v41 = vld [vmem:[#allocation16_spill] sm:$0xff] }
  0xf1   :  { %v826_v23 = vrot.slane %v821_v17, %v1193_v25  ;;  %v1839_v17 = vrot.slane %v1651_v24, 4  ;;  %v892_v28 = vrot.slane %v1714_v35, 7 }
  0xf3   :  { %v827_v56 = vmul.f32 %v826_v23, %v1617_v20  ;;  %v828_v0 = vmul.f32 %v826_v23, %v1621_v12  ;;  %v829_v3 = vmul.f32 %v826_v23, %v1623_v15  ;;  %v830_v45 = vmul.f32 %v826_v23, %v1625_v60 }
  0xf5   :  { %v849_v63 = vpop.permute.xlu1 %848  ;;  %v835_v34 = vrot.slane %v827_v56, 5  ;;  %v836_v6 = vrot.slane %v828_v0, 5  ;;  %v837_v19 = vrot.slane %v829_v3, 5  ;;  %v838_v13 = vrot.slane %v830_v45, 5 }
  0xf6   :  { %v854_v44 = vrot.slane %v849_v63, %v1193_v25  ;;  %v891_v63 = vrot.slane %v1680_v31, 7  ;;  %v893_v0 = vrot.slane %v1718_v7, 7  ;;  %v894_v3 = vrot.slane %v1722_v4, 7 }
  0xf7   :  { %v844_v52 = vadd.f32 %v836_v6, %v816_v51 }
  0xf8   :  { %v855_v46 = vmul.f32 %v854_v44, %v1617_v20  ;;  %v856_v61 = vmul.f32 %v854_v44, %v1621_v12  ;;  %v857_v10 = vmul.f32 %v854_v44, %v1623_v15  ;;  %v858_v53 = vmul.f32 %v854_v44, %v1625_v60 }
  0xf9   :  { %v817_v20 = vadd.f32 %v1839_v17, %v789_v33  ;;  %v1840_v12 = vrot.slane %v1654_v16, 4  ;;  %v843_v15 = vadd.f32 %v835_v34, %v815_v48 }
  0xfa   :  { %v638_v5 = vpop.permute.xlu1 %637  ;;  %v863_v54 = vrot.slane %v855_v46, 6  ;;  %v864_v29 = vrot.slane %v856_v61, 6  ;;  %v865_v43 = vrot.slane %v857_v10, 6  ;;  %v866_v14 = vrot.slane %v858_v53, 6 }
  0xfb   :  { %v660_v8 = vmul.f32 %v1836_v1, %v638_v5  ;;  %v661_v47 = vmul.f32 %v1837_v59, %v638_v5  ;;  %v662_v36 = vmul.f32 %v1838_v41, %v638_v5  ;;  %v663_v38 = vmul.f32 %v1823_v30, %v638_v5  ;;  %v1841_v1 = vld [vmem:[#allocation6_spill] sm:$0xff] }
  0xfc   :  { %v818_v11 = vadd.f32 %v1840_v12, %v790_v39  ;;  %v845_v22 = vadd.f32 %v837_v19, %v817_v20  ;;  %v871_v57 = vadd.f32 %v863_v54, %v843_v15  ;;  %v872_v42 = vadd.f32 %v864_v29, %v844_v52 }
  0xfd   :  { %v668_v18 = vadd.f32 %v660_v8, %v628_v50  ;;  %v669_v60 = vadd.f32 %v661_v47, %v629_v27  ;;  %v670_v62 = vadd.f32 %v662_v36, %v630_v2  ;;  %v671_v23 = vadd.f32 %v663_v38, %v631_v9 }
  0xfe   :  { %v846_v37 = vadd.f32 %v838_v13, %v818_v11  ;;  %v873_v26 = vadd.f32 %v865_v43, %v845_v22  ;;  %v955_v50 = vunpack.c.0.s8 %v954_v55  ;;  %v899_v27 = vadd.f32 %v891_v63, %v871_v57 }
  0xff   :  { %v905_v40 = vpop.permute.xlu1 %904  ;;  %v676_v30 = vmax.f32 %v668_v18, 0.0  ;;  %v677_v49 = vmax.f32 %v669_v60, 0.0  ;;  %v678_v32 = vmax.f32 %v670_v62, 0.0  ;;  %v679_v16 = vmax.f32 %v671_v23, 0.0 }
 0x100   :  { %v910_v24 = vrot.slane %v905_v40, %v1193_v25  ;;  %v874_v56 = vadd.f32 %v866_v14, %v846_v37  ;;  %v900_v2 = vadd.f32 %v892_v28, %v872_v42  ;;  %v901_v34 = vadd.f32 %v893_v0, %v873_v26 }
 0x101   :  { %v958_v8 = vsub.s32 %v955_v50, %v1841_v1  ;;  %v1842_v12 = vlaneseq }
 0x102   :  { %v911_v44 = vmul.f32 %v910_v24, %v676_v30  ;;  %v912_v21 = vmul.f32 %v910_v24, %v677_v49  ;;  %v913_v33 = vmul.f32 %v910_v24, %v678_v32  ;;  %v914_v39 = vmul.f32 %v910_v24, %v679_v16 }
 0x103   :  { %v902_v9 = vadd.f32 %v894_v3, %v874_v56  ;;  %vm978_vm0 = vcmp.lt.s32.totalorder %v1842_v12, 512 }
 0x104   :  { %v921_v45 = vpop.permute.xlu1 %920  ;;  %v915_v13 = vadd.f32 %v911_v44, %v899_v27  ;;  %v916_v7 = vadd.f32 %v912_v21, %v900_v2  ;;  %v917_v5 = vadd.f32 %v913_v33, %v901_v34 }
 0x105   :  { %v926_v48 = vrot.slane %v921_v45, %v1193_v25  ;;  %v918_v4 = vadd.f32 %v914_v39, %v902_v9 }
 0x107   :  { %v927_v6 = vmul.f32 %v926_v48, %v676_v30  ;;  %v928_v31 = vmul.f32 %v926_v48, %v677_v49  ;;  %v929_v19 = vmul.f32 %v926_v48, %v678_v32  ;;  %v930_v35 = vmul.f32 %v926_v48, %v679_v16 }
 0x109   :  { %v935_v46 = vrot.slane %v927_v6, 1  ;;  %v936_v61 = vrot.slane %v928_v31, 1  ;;  %v937_v10 = vrot.slane %v929_v19, 1  ;;  %v938_v53 = vrot.slane %v930_v35, 1 }
 0x10b   :  { %v943_v25 = vadd.f32 %v935_v46, %v915_v13  ;;  %v944_v59 = vadd.f32 %v936_v61, %v916_v7  ;;  %v945_v47 = vadd.f32 %v937_v10, %v917_v5  ;;  %v946_v41 = vadd.f32 %v938_v53, %v918_v4 }
 0x10d   :  { %v951_v36 = vcombine.low %v943_v25, %v944_v59  ;;  %v952_v38 = vcombine.low %v945_v47, %v946_v41 }
 0x10f   :  { %v959_v51 = vrot.slane %v951_v36, %v958_v8  ;;  %v966_v17 = vrot.slane %v952_v38, %v958_v8 }
 0x111   :  { %v967_v20 = vcombine.low %v959_v51, %v966_v17 }
 0x113   :  { %v974_v11 = vrot.slane %v967_v20, %v958_v8 }
 0x115   :  { %980 = vst.msk [vmem:[#allocation3] sm:$0xf] %vm978_vm0, %v974_v11 }
 0x116   :  { %1057 = shalt.err (!%p1054_p4)
}
 0x117   :  { %990 = dma.vmem_to_hbm [thread:$0]  %s988_s17, 64, %s1762_s7, [#allocation4]  }
 0x118   :  { %1066 = dma.done.wait [#allocation4], 64  }
 0x119   :  { %1067 = vsyncadd [#allocation4], 4294967232 }
 0x11a   :  { %994 = vsyncpa [#allocation4], 1 }

</bundles_post_ra>
